<compile_context>
chip_gen: v5e
topology: v5e:2x2
jax: 0.10.0
libtpu: 0.0.40
codegen_flags: <defaults>
</compile_context>

<pallas_src>
import jax
import jax.numpy as jnp
from jax.experimental import pallas as pl
from jax.experimental.pallas import tpu as pltpu

_LANE = 128        # lane width (last dim) for dense vector ops / stores
_BF16_SUBLANE = 16 # bf16 packs 2 rows per sublane -> [16,128] vreg tile
_BN_EPS = 1e-8


def _round_up(x, m):
    return (x + m - 1) // m * m


def _vmem_capacity_bytes():
    """Physical per-core VMEM (v7x: 64 MiB, v5e/v6e: 128 MiB)."""
    try:
        info = pltpu.get_tpu_info()
        cap = getattr(info, "vmem_capacity_bytes", None)
        if cap:
            return int(cap)
    except Exception:
        pass
    return 64 * 1024 * 1024  # conservative fallback (v7x per-TC)


# ---------------------------------------------------------------------------
# Fused kernel: all layers in one invocation, activation resident in VMEM.
# ---------------------------------------------------------------------------
def _make_fused_mlp_kernel(n_layers, n_valid, n_pad):
    """Returns kernel(x, w_0..w_{L-1}, g_0..g_{L-2}, b_0..b_{L-2}, out)."""

    def kernel(*refs):
        L = n_layers
        x_ref = refs[0]
        w_refs = refs[1:1 + L]
        g_refs = refs[1 + L:2 * L]
        b_refs = refs[2 * L:3 * L - 1]
        o_ref = refs[-1]

        inv_n = 1.0 / float(n_valid)          # true batch size (not padded)
        # Mask is only needed when padded rows would feed a *subsequent*
        # hidden layer's BN statistics, i.e. only when there are >= 2 hidden
        # layers and the batch was actually padded.
        need_mask = (n_pad > n_valid) and (L >= 3)
        if need_mask:
            rows = jax.lax.broadcasted_iota(jnp.int32, (n_pad, 1), 0)
            row_mask = (rows < n_valid).astype(jnp.float32)

        h = x_ref[...]                         # bf16 [n_pad, d_pad]
        for i in range(L - 1):
            # Linear: bf16 operands on the MXU, f32 accumulation.
            y = jnp.dot(h, w_refs[i][...], preferred_element_type=jnp.float32)
            # One-pass BatchNorm statistics (biased variance, training mode).
            # Padded batch rows are zero, so they contribute nothing to the
            # sums; we divide by the true batch size.  Clamp against f32
            # cancellation so rsqrt never sees a negative value.
            s1 = jnp.sum(y, axis=0, keepdims=True)
            s2 = jnp.sum(y * y, axis=0, keepdims=True)
            mean = s1 * inv_n
            var = jnp.maximum(s2 * inv_n - mean * mean, 0.0)
            inv_std = jax.lax.rsqrt(var + _BN_EPS)
            z = (y - mean) * (inv_std * g_refs[i][...]) + b_refs[i][...]
            a = z * jax.nn.sigmoid(z)          # Swish, f32 on VPU/EUP
            if need_mask and i < L - 2:
                # Re-zero padded rows so they never pollute the NEXT hidden
                # layer's BN stats.  Skipped on the last hidden layer: its
                # padded output rows are sliced off after the final Linear.
                a = a * row_mask
            h = a.astype(jnp.bfloat16)         # next layer's MXU operand
        # Final Linear (no bias, no BN/activation).
        y = jnp.dot(h, w_refs[-1][...], preferred_element_type=jnp.float32)
        o_ref[...] = y.astype(o_ref.dtype)

    return kernel


# ---------------------------------------------------------------------------
# Builder: pad params ONCE, return a jitted forward closed over padded params.
# ---------------------------------------------------------------------------
def make_mlp_forward(params):
    weights = params["weights"]               # list of [d_in, d_out] f32
    gammas = params["gammas"]
    betas = params["betas"]
    L = len(weights)

    dims = [weights[0].shape[0]] + [w.shape[1] for w in weights]
    dims_pad = [_round_up(d, _LANE) for d in dims]

    # Pad features to multiples of 128 (lane-dense) and cast MXU operands to
    # bf16 ONCE at build time.  gamma pads with 1 and beta with 0 so padded
    # feature columns remain exactly zero through BN + Swish.
    w_p = [
        jnp.zeros((dims_pad[i], dims_pad[i + 1]), jnp.bfloat16)
        .at[:dims[i], :dims[i + 1]].set(weights[i].astype(jnp.bfloat16))
        for i in range(L)
    ]
    g_p = [
        jnp.ones((1, dims_pad[i + 1]), jnp.float32)
        .at[:, :dims[i + 1]].set(gammas[i])
        for i in range(L - 1)
    ]
    b_p = [
        jnp.zeros((1, dims_pad[i + 1]), jnp.float32)
        .at[:, :dims[i + 1]].set(betas[i])
        for i in range(L - 1)
    ]

    vmem_cap = _vmem_capacity_bytes()
    vmem_budget = int(0.75 * vmem_cap)        # headroom for Mosaic scratch

    @jax.jit
    def forward(x):
        n = x.shape[0]
        n_pad = _round_up(max(n, 1), _BF16_SUBLANE)   # bf16: 2 rows/sublane

        x_p = (jnp.zeros((n_pad, dims_pad[0]), jnp.bfloat16)
               .at[:n, :dims[0]].set(x.astype(jnp.bfloat16)))

        # --- VMEM requirement (all trace-time Python ints) -----------------
        io_bytes = (
            n_pad * dims_pad[0] * 2                       # x_p (bf16)
            + sum(dims_pad[i] * dims_pad[i + 1] * 2 for i in range(L))
            + sum(2 * dims_pad[i + 1] * 4 for i in range(L - 1))  # gamma+beta
            + n_pad * dims_pad[-1] * 4                    # f32 output
        )
        max_dp = max(dims_pad[1:]) if L >= 1 else dims_pad[0]
        # generous bound: ~4 live f32 tiles (y, y*y, z, a) + resident bf16 h
        scratch_bytes = 4 * n_pad * max_dp * 4 + n_pad * max(dims_pad) * 2
        vmem_need = io_bytes + scratch_bytes + (4 << 20)
        vmem_limit = max(16 << 20, min(vmem_need, vmem_budget))
        # TODO(synk): if vmem_need > vmem_budget, switch to the K/N-tiled grid
        # with BN accumulators instead of relying on spills.

        flops = sum(2 * n_pad * dims_pad[i] * dims_pad[i + 1]
                    for i in range(L))
        transcendentals = sum(n_pad * dims_pad[i + 1] for i in range(L - 1))

        vmem_spec = pl.BlockSpec(memory_space=pltpu.MemorySpace.VMEM)
        kernel = _make_fused_mlp_kernel(L, n, n_pad)

        out_pad = pl.pallas_call(
            kernel,
            out_shape=jax.ShapeDtypeStruct((n_pad, dims_pad[-1]), jnp.float32),
            in_specs=[vmem_spec] * (3 * L - 1),
            out_specs=vmem_spec,
            compiler_params=pltpu.CompilerParams(
                vmem_limit_bytes=vmem_limit),
            cost_estimate=pl.CostEstimate(
                flops=flops,
                transcendentals=transcendentals,
                bytes_accessed=io_bytes),
        )(x_p, *w_p, *g_p, *b_p)

        return out_pad[:n, :dims[-1]]

    return forward


# ---------------------------------------------------------------------------
# Parameter init matching the module's shapes (PyTorch layout, transposed).
# ---------------------------------------------------------------------------
def init_mlp_params(key, in_depth, hidden_depths, out_depth):
    depths = [in_depth, *hidden_depths, out_depth]
    params = {"weights": [], "gammas": [], "betas": []}
    for i in range(len(depths) - 1):
        key, wk, gk, bk = jax.random.split(key, 4)
        fan_in = depths[i]
        w_pt = jax.random.uniform(
            wk, (depths[i + 1], depths[i]), jnp.float32,
            minval=-1.0 / jnp.sqrt(fan_in), maxval=1.0 / jnp.sqrt(fan_in),
        )
        params["weights"].append(jnp.transpose(w_pt))      # -> [in, out]
        if i != len(depths) - 2:
            gamma = 1.0 + 0.1 * jax.random.normal(
                gk, (1, depths[i + 1]), jnp.float32)
            beta = 0.1 * jax.random.normal(bk, (1, depths[i + 1]), jnp.float32)
            params["gammas"].append(gamma)
            params["betas"].append(beta)
    return params


# ---------------------------------------------------------------------------
# Pure-JAX reference (PyTorch semantics, same bf16 matmul-operand precision).
# ---------------------------------------------------------------------------
def mlp_forward_ref(x, params):
    weights, gammas, betas = (params["weights"], params["gammas"],
                              params["betas"])
    L = len(weights)
    h = x
    for i in range(L):
        y = jnp.dot(h.astype(jnp.bfloat16), weights[i].astype(jnp.bfloat16),
                    preferred_element_type=jnp.float32)
        if i != L - 1:
            mean = jnp.mean(y, axis=0, keepdims=True)
            var = jnp.mean((y - mean) ** 2, axis=0, keepdims=True)   # biased
            y = (y - mean) / jnp.sqrt(var + _BN_EPS)
            y = y * gammas[i] + betas[i]
            y = y * jax.nn.sigmoid(y)
        h = y
    return h


if __name__ == "__main__":
    in_depth, hidden_depths, out_depth = 16, [32, 32], 8
    batch = 8

    key = jax.random.PRNGKey(0)
    key, xk = jax.random.split(key)
    x = jax.random.normal(xk, (batch, in_depth), jnp.float32)
    params = init_mlp_params(key, in_depth, hidden_depths, out_depth)

    mlp_forward = make_mlp_forward(params)     # pads/casts params once

    out = mlp_forward(x)
    out = jax.block_until_ready(out)

    ref = mlp_forward_ref(x, params)
    assert out.shape == (batch, out_depth)
    assert jnp.allclose(out, ref, atol=5e-3, rtol=5e-3), (
        jnp.max(jnp.abs(out - ref)))

    # second call reuses the cached trace / padded params (no re-padding)
    out2 = jax.block_until_ready(mlp_forward(x))
    assert jnp.allclose(out2, out)

    print("KERNEL_OK")
</pallas_src>

<mosaic_0001>
module attributes {stable_mosaic.version = 11 : i64} {
  func.func @kernel(%arg0: memref<16x128xbf16, #tpu.memory_space<vmem>>, %arg1: memref<128x128xbf16, #tpu.memory_space<vmem>>, %arg2: memref<128x128xbf16, #tpu.memory_space<vmem>>, %arg3: memref<128x128xbf16, #tpu.memory_space<vmem>>, %arg4: memref<1x128xf32, #tpu.memory_space<vmem>>, %arg5: memref<1x128xf32, #tpu.memory_space<vmem>>, %arg6: memref<1x128xf32, #tpu.memory_space<vmem>>, %arg7: memref<1x128xf32, #tpu.memory_space<vmem>>, %arg8: memref<16x128xf32, #tpu.memory_space<vmem>>) attributes {dimension_semantics = [], scalar_prefetch = 0 : i64, scratch_operands = 0 : i64, tpu.core_type = #tpu.core_type<tc>} {
    %0 = tpu.iota {dimensions = array<i32: 0>} : vector<16x1xi32>
    %c8_i32 = arith.constant 8 : i32
    %1 = vector.broadcast %c8_i32 : i32 to vector<16x1xi32>
    %2 = arith.cmpi slt, %0, %1 : vector<16x1xi32>
    %3 = arith.extui %2 : vector<16x1xi1> to vector<16x1xi32>
    %4 = arith.sitofp %3 : vector<16x1xi32> to vector<16x1xf32>
    %c0 = arith.constant 0 : index
    %c0_0 = arith.constant 0 : index
    %5 = vector.load %arg0[%c0, %c0_0] : memref<16x128xbf16, #tpu.memory_space<vmem>>, vector<16x128xbf16>
    %c0_1 = arith.constant 0 : index
    %c0_2 = arith.constant 0 : index
    %6 = vector.load %arg1[%c0_1, %c0_2] : memref<128x128xbf16, #tpu.memory_space<vmem>>, vector<128x128xbf16>
    %cst = arith.constant dense<0.000000e+00> : vector<16x128xf32>
    %7 = tpu.matmul %5, %6, %cst {dimension_numbers = #tpu.dot_dimension_numbers<[1], [0], [0], [1], [0, 0, 1, 1], [], []>} : vector<16x128xbf16>, vector<128x128xbf16>, vector<16x128xf32> -> vector<16x128xf32>
    %cst_3 = arith.constant dense<0.000000e+00> : vector<128xf32>
    %8 = vector.multi_reduction <add>, %7, %cst_3 [0] : vector<16x128xf32> to vector<128xf32>
    %9 = vector.shape_cast %8 : vector<128xf32> to vector<1x128xf32>
    %10 = arith.mulf %7, %7 : vector<16x128xf32>
    %cst_4 = arith.constant dense<0.000000e+00> : vector<128xf32>
    %11 = vector.multi_reduction <add>, %10, %cst_4 [0] : vector<16x128xf32> to vector<128xf32>
    %12 = vector.shape_cast %11 : vector<128xf32> to vector<1x128xf32>
    %cst_5 = arith.constant 1.250000e-01 : f32
    %13 = vector.broadcast %cst_5 : f32 to vector<1x128xf32>
    %14 = arith.mulf %9, %13 : vector<1x128xf32>
    %cst_6 = arith.constant 1.250000e-01 : f32
    %15 = vector.broadcast %cst_6 : f32 to vector<1x128xf32>
    %16 = arith.mulf %12, %15 : vector<1x128xf32>
    %17 = arith.mulf %14, %14 : vector<1x128xf32>
    %18 = arith.subf %16, %17 : vector<1x128xf32>
    %cst_7 = arith.constant 0.000000e+00 : f32
    %19 = vector.broadcast %cst_7 : f32 to vector<1x128xf32>
    %20 = arith.maximumf %18, %19 : vector<1x128xf32>
    %cst_8 = arith.constant 9.99999993E-9 : f32
    %21 = vector.broadcast %cst_8 : f32 to vector<1x128xf32>
    %22 = arith.addf %20, %21 : vector<1x128xf32>
    %23 = math.rsqrt %22 : vector<1x128xf32>
    %24 = vector.broadcast %14 : vector<1x128xf32> to vector<16x128xf32>
    %25 = arith.subf %7, %24 : vector<16x128xf32>
    %c0_9 = arith.constant 0 : index
    %c0_10 = arith.constant 0 : index
    %26 = vector.load %arg4[%c0_9, %c0_10] : memref<1x128xf32, #tpu.memory_space<vmem>>, vector<1x128xf32>
    %27 = arith.mulf %23, %26 : vector<1x128xf32>
    %28 = vector.broadcast %27 : vector<1x128xf32> to vector<16x128xf32>
    %29 = arith.mulf %25, %28 : vector<16x128xf32>
    %c0_11 = arith.constant 0 : index
    %c0_12 = arith.constant 0 : index
    %30 = vector.load %arg6[%c0_11, %c0_12] : memref<1x128xf32, #tpu.memory_space<vmem>>, vector<1x128xf32>
    %31 = vector.broadcast %30 : vector<1x128xf32> to vector<16x128xf32>
    %32 = arith.addf %29, %31 : vector<16x128xf32>
    %33 = arith.negf %32 : vector<16x128xf32>
    %34 = math.exp %33 : vector<16x128xf32>
    %cst_13 = arith.constant 1.000000e+00 : f32
    %35 = vector.broadcast %cst_13 : f32 to vector<16x128xf32>
    %36 = arith.addf %35, %34 : vector<16x128xf32>
    %37 = arith.divf %35, %36 : vector<16x128xf32>
    %38 = arith.mulf %32, %37 : vector<16x128xf32>
    %39 = vector.broadcast %4 : vector<16x1xf32> to vector<16x128xf32>
    %40 = arith.mulf %38, %39 : vector<16x128xf32>
    %41 = arith.truncf %40 : vector<16x128xf32> to vector<16x128xbf16>
    %c0_14 = arith.constant 0 : index
    %c0_15 = arith.constant 0 : index
    %42 = vector.load %arg2[%c0_14, %c0_15] : memref<128x128xbf16, #tpu.memory_space<vmem>>, vector<128x128xbf16>
    %cst_16 = arith.constant dense<0.000000e+00> : vector<16x128xf32>
    %43 = tpu.matmul %41, %42, %cst_16 {dimension_numbers = #tpu.dot_dimension_numbers<[1], [0], [0], [1], [0, 0, 1, 1], [], []>} : vector<16x128xbf16>, vector<128x128xbf16>, vector<16x128xf32> -> vector<16x128xf32>
    %cst_17 = arith.constant dense<0.000000e+00> : vector<128xf32>
    %44 = vector.multi_reduction <add>, %43, %cst_17 [0] : vector<16x128xf32> to vector<128xf32>
    %45 = vector.shape_cast %44 : vector<128xf32> to vector<1x128xf32>
    %46 = arith.mulf %43, %43 : vector<16x128xf32>
    %cst_18 = arith.constant dense<0.000000e+00> : vector<128xf32>
    %47 = vector.multi_reduction <add>, %46, %cst_18 [0] : vector<16x128xf32> to vector<128xf32>
    %48 = vector.shape_cast %47 : vector<128xf32> to vector<1x128xf32>
    %cst_19 = arith.constant 1.250000e-01 : f32
    %49 = vector.broadcast %cst_19 : f32 to vector<1x128xf32>
    %50 = arith.mulf %45, %49 : vector<1x128xf32>
    %cst_20 = arith.constant 1.250000e-01 : f32
    %51 = vector.broadcast %cst_20 : f32 to vector<1x128xf32>
    %52 = arith.mulf %48, %51 : vector<1x128xf32>
    %53 = arith.mulf %50, %50 : vector<1x128xf32>
    %54 = arith.subf %52, %53 : vector<1x128xf32>
    %cst_21 = arith.constant 0.000000e+00 : f32
    %55 = vector.broadcast %cst_21 : f32 to vector<1x128xf32>
    %56 = arith.maximumf %54, %55 : vector<1x128xf32>
    %cst_22 = arith.constant 9.99999993E-9 : f32
    %57 = vector.broadcast %cst_22 : f32 to vector<1x128xf32>
    %58 = arith.addf %56, %57 : vector<1x128xf32>
    %59 = math.rsqrt %58 : vector<1x128xf32>
    %60 = vector.broadcast %50 : vector<1x128xf32> to vector<16x128xf32>
    %61 = arith.subf %43, %60 : vector<16x128xf32>
    %c0_23 = arith.constant 0 : index
    %c0_24 = arith.constant 0 : index
    %62 = vector.load %arg5[%c0_23, %c0_24] : memref<1x128xf32, #tpu.memory_space<vmem>>, vector<1x128xf32>
    %63 = arith.mulf %59, %62 : vector<1x128xf32>
    %64 = vector.broadcast %63 : vector<1x128xf32> to vector<16x128xf32>
    %65 = arith.mulf %61, %64 : vector<16x128xf32>
    %c0_25 = arith.constant 0 : index
    %c0_26 = arith.constant 0 : index
    %66 = vector.load %arg7[%c0_25, %c0_26] : memref<1x128xf32, #tpu.memory_space<vmem>>, vector<1x128xf32>
    %67 = vector.broadcast %66 : vector<1x128xf32> to vector<16x128xf32>
    %68 = arith.addf %65, %67 : vector<16x128xf32>
    %69 = arith.negf %68 : vector<16x128xf32>
    %70 = math.exp %69 : vector<16x128xf32>
    %cst_27 = arith.constant 1.000000e+00 : f32
    %71 = vector.broadcast %cst_27 : f32 to vector<16x128xf32>
    %72 = arith.addf %71, %70 : vector<16x128xf32>
    %73 = arith.divf %71, %72 : vector<16x128xf32>
    %74 = arith.mulf %68, %73 : vector<16x128xf32>
    %75 = arith.truncf %74 : vector<16x128xf32> to vector<16x128xbf16>
    %c0_28 = arith.constant 0 : index
    %c0_29 = arith.constant 0 : index
    %76 = vector.load %arg3[%c0_28, %c0_29] : memref<128x128xbf16, #tpu.memory_space<vmem>>, vector<128x128xbf16>
    %cst_30 = arith.constant dense<0.000000e+00> : vector<16x128xf32>
    %77 = tpu.matmul %75, %76, %cst_30 {dimension_numbers = #tpu.dot_dimension_numbers<[1], [0], [0], [1], [0, 0, 1, 1], [], []>} : vector<16x128xbf16>, vector<128x128xbf16>, vector<16x128xf32> -> vector<16x128xf32>
    %c0_31 = arith.constant 0 : index
    %c0_32 = arith.constant 0 : index
    %78 = vector.load %arg8[%c0_31, %c0_32] : memref<16x128xf32, #tpu.memory_space<vmem>>, vector<16x128xf32>
    tpu.vector_store %arg8[%c0_31, %c0_32], %77 {strides = array<i32>} : memref<16x128xf32, #tpu.memory_space<vmem>>, vector<16x128xf32>,
    return
  }
}

</mosaic_0001>

<bundles_post_ra>
// kernel: forward.1
= control target key start
LH: loop header
LB: loop body
LE: loop exit
PB: predicated region body
PF: predicated region fallthrough
CT: control target
= control target key end

     0   :  { %13 = vsyncpa [#allocation3], 0  ;;  %s821_s0 = inlined_call_operand.vmem [shape: bf16[16,128], index: 0, kind: input, shape index: {}]   ;;  %s822_s1 = inlined_call_operand.hbm [shape: bf16[128,128], index: 1, kind: input, shape index: {}]   ;;  %s823_s2 = inlined_call_operand.hbm [shape: bf16[128,128], index: 2, kind: input, shape index: {}]   ;;  %s824_s3 = inlined_call_operand.hbm [shape: bf16[128,128], index: 3, kind: input, shape index: {}]   ;;  %s825_s4 = inlined_call_operand.vmem [shape: f32[1,128], index: 4, kind: input, shape index: {}]   ;;  %s826_s5 = inlined_call_operand.vmem [shape: f32[1,128], index: 5, kind: input, shape index: {}]   ;;  %s827_s6 = inlined_call_operand.vmem [shape: f32[1,128], index: 6, kind: input, shape index: {}]   ;;  %s828_s7 = inlined_call_operand.vmem [shape: f32[1,128], index: 7, kind: input, shape index: {}]   ;;  %s829_s8 = inlined_call_operand.vmem [shape: f32[16,128], index: 8, kind: output, shape index: {}]  }
   0x1   :  { %14 = vsyncpa [#allocation5], 0  ;;  %s34_s29 = sshll.u32 %s823_s2, 4  ;;  %s741_s30 = smov [#allocation4]   ;;  %s35_s29 = int_to_ptr.hbm [resolvable:$true] %s34_s29 }
   0x2   :  { %s36_s9 = sshll.u32 %s741_s30, 4  ;;  %s21_s12 = sshll.u32 %s822_s1, 4  ;;  %s37_s9 = int_to_ptr.vmem [resolvable:$true] %s36_s9  ;;  %s22_s12 = int_to_ptr.hbm [resolvable:$true] %s21_s12 }
   0x3   :  { %s742_s13 = smov 64   ;;  %s743_s14 = smov 4  }
   0x4   :  { %42 = dma.hbm_to_vmem [thread:$0]  %s35_s29, 1024, %s37_s9, [#allocation5], %s742_s13, %s742_s13, %s743_s14  }
   0x5   :  { %s744_s15 = smov [#allocation2]   ;;  %s47_s19 = sshll.u32 %s824_s3, 4  ;;  %s48_s19 = int_to_ptr.hbm [resolvable:$true] %s47_s19 }
   0x6   :  { %s23_s16 = sshll.u32 %s744_s15, 4  ;;  %s745_s2 = smov [#allocation6]   ;;  %s24_s16 = int_to_ptr.vmem [resolvable:$true] %s23_s16 }
   0x7   :  { %29 = dma.hbm_to_vmem [thread:$0]  %s22_s12, 1024, %s24_s16, [#allocation3], %s742_s13, %s742_s13, %s743_s14  }
   0x8   :  { %s49_s20 = sshll.u32 %s745_s2, 4  ;;  %s50_s20 = int_to_ptr.vmem [resolvable:$true] %s49_s20 }
   0x9   :  { %55 = dma.hbm_to_vmem [thread:$0]  %s48_s19, 1024, %s50_s20, [#allocation5], %s742_s13, %s742_s13, %s743_s14  }
   0xa   :  { %737 = dma.done.wait [#allocation3], 1024  }
   0xb   :  { %738 = vsyncadd [#allocation3], 4294966272 }
   0xc   :  { %739 = dma.done.wait [#allocation5], 2048  }
   0xd   :  { %740 = vsyncadd [#allocation5], 4294965248  ;;  %v621_v0 = vld [vmem:[#allocation2 + $0x38] sm:$0xff]  ;;  %v620_v1 = vld [vmem:[#allocation2 + $0x30] sm:$0xff] }
   0xe   :  { %157 = vmatpush.bf16.msra.mxu0 %v621_v0  ;;  %v619_v2 = vld [vmem:[#allocation2 + $0x28] sm:$0xff]  ;;  %v618_v3 = vld [vmem:[#allocation2 + $0x20] sm:$0xff]  ;;  %v617_v4 = vld [vmem:[#allocation2 + $0x18] sm:$0xff] }
   0xf   :  { %v616_v5 = vld [vmem:[#allocation2 + $0x10] sm:$0xff]  ;;  %v615_v6 = vld [vmem:[#allocation2 + $0x8] sm:$0xff]  ;;  %v614_v7 = vld [vmem:[#allocation2] sm:$0xff] }
  0x10   :  { %v613_v8 = vld [vmem:[%s821_s0] sm:$0xff]  ;;  %v629_v31 = vld [vmem:[#allocation4 + $0x38] sm:$0xff]  ;;  %v628_v34 = vld [vmem:[#allocation4 + $0x30] sm:$0xff] }
  0x11   :  { %323 = vmatpush.bf16.msra.mxu1 %v629_v31  ;;  %v627_v35 = vld [vmem:[#allocation4 + $0x28] sm:$0xff]  ;;  %v626_v36 = vld [vmem:[#allocation4 + $0x20] sm:$0xff]  ;;  %v625_v40 = vld [vmem:[#allocation4 + $0x18] sm:$0xff] }
  0x12   :  { %158 = vmatpush.bf16.msra.mxu0 %v620_v1  ;;  %v624_v43 = vld [vmem:[#allocation4 + $0x10] sm:$0xff]  ;;  %v205_v45 = vld [vmem:[%s825_s4] sm:$0x1]  ;;  %v623_v47 = vld [vmem:[#allocation4 + $0x8] sm:$0xff] }
  0x13   :  { %v643_v51 = vld [vmem:[%s827_s6] ss:$0 sm:$0xff] }
  0x14   :  { %v622_v53 = vld [vmem:[#allocation4] sm:$0xff] }
  0x15   :  { %324 = vmatpush.bf16.msra.mxu1 %v628_v34 }
  0x16   :  { %159 = vmatpush.bf16.msra.mxu0 %v619_v2 }
  0x19   :  { %325 = vmatpush.bf16.msra.mxu1 %v627_v35 }
  0x1a   :  { %160 = vmatpush.bf16.msra.mxu0 %v618_v3 }
  0x1d   :  { %326 = vmatpush.bf16.msra.mxu1 %v626_v36 }
  0x1e   :  { %161 = vmatpush.bf16.msra.mxu0 %v617_v4 }
  0x21   :  { %327 = vmatpush.bf16.msra.mxu1 %v625_v40 }
  0x22   :  { %162 = vmatpush.bf16.msra.mxu0 %v616_v5 }
  0x25   :  { %328 = vmatpush.bf16.msra.mxu1 %v624_v43  ;;  %v637_v43 = vld [vmem:[#allocation6 + $0x38] sm:$0xff] }
  0x26   :  { %163 = vmatpush.bf16.msra.mxu0 %v615_v6  ;;  %487 = vmatpush.bf16.msra.mxu2 %v637_v43 }
  0x29   :  { %329 = vmatpush.bf16.msra.mxu1 %v623_v47 }
  0x2a   :  { %164 = vmatpush.bf16.msra.mxu0 %v614_v7 }
  0x2d   :  { %165 = vmatmul.bf16.vlgmr.msra.gmra.mxu0 %v613_v8  ;;  %330 = vmatpush.bf16.msra.mxu1 %v622_v53 }
  0xaa   :  { %v166_v9 = vpop.f32.mrf.mxu0 }
  0xab   :  { %v178_v11 = vmul.f32 %v166_v9, %v166_v9 }
  0xb2   :  { %v168_v10 = vpop.f32.mrf.mxu0 }
  0xb3   :  { %v171_v12 = vadd.f32 %v168_v10, %v166_v9  ;;  %v179_v13 = vmul.f32 %v168_v10, %v168_v10 }
  0xb5   :  { %v172_v14 = vrot.slane %v171_v12, 4  ;;  %v180_v15 = vadd.f32 %v179_v13, %v178_v11 }
  0xb7   :  { %v173_v16 = vadd.f32 %v172_v14, %v171_v12  ;;  %v181_v17 = vrot.slane %v180_v15, 4 }
  0xb9   :  { %v174_v18 = vrot.slane %v173_v16, 2  ;;  %v182_v19 = vadd.f32 %v181_v17, %v180_v15 }
  0xbb   :  { %v175_v20 = vadd.f32 %v174_v18, %v173_v16  ;;  %v183_v21 = vrot.slane %v182_v19, 2 }
  0xbd   :  { %v176_v22 = vrot.slane %v175_v20, 1  ;;  %v184_v23 = vadd.f32 %v183_v21, %v182_v19 }
  0xbf   :  { %v177_v24 = vadd.f32 %v176_v22, %v175_v20  ;;  %v185_v25 = vrot.slane %v184_v23, 1 }
  0xc1   :  { %v186_v26 = vadd.f32 %v185_v25, %v184_v23  ;;  %v187_v27 = vmul.f32 0.125, %v177_v24 }
  0xc3   :  { %v188_v28 = vmul.f32 0.125, %v186_v26  ;;  %v189_v29 = vmul.f32 %v187_v27, %v187_v27  ;;  %v204_v49 = vsub.f32 %v168_v10, %v187_v27  ;;  %v203_v52 = vsub.f32 %v166_v9, %v187_v27 }
  0xc5   :  { %v190_v30 = vsub.f32 %v188_v28, %v189_v29 }
  0xc7   :  { %v191_v32 = vmax.f32 %v190_v30, 0.0 }
  0xc9   :  { %v192_v33 = vadd.f32 1e-08, %v191_v32 }
  0xcb   :  { %645 = vrsqrt.f32 %v192_v33  ;;  %vm199_vm1 = vweird.f32 %v192_v33 }
  0xd1   :  { %v646_v37 = vpop.eup %645 }
  0xd2   :  { %v194_v38 = vmul.f32 %v646_v37, %v192_v33  ;;  %vm200_vm0 = vweird.f32 %v646_v37 }
  0xd3   :  { %vm201_vm2 = vmor %vm199_vm1, %vm200_vm0 }
  0xd4   :  { %v195_v39 = vmul.f32 %v646_v37, %v194_v38 }
  0xd6   :  { %v196_v41 = vmul.f32 0.5, %v195_v39 }
  0xd8   :  { %v197_v42 = vsub.f32 1.5, %v196_v41 }
  0xda   :  { %v198_v44 = vmul.f32 %v646_v37, %v197_v42 }
  0xdc   :  { %v202_v46 = vsel %vm201_vm2, %v646_v37, %v198_v44 }
  0xdd   :  { %v206_v48 = vmul.f32 %v205_v45, %v202_v46  ;;  %v636_v46 = vld [vmem:[#allocation6 + $0x30] sm:$0xff] }
  0xde   :  { %488 = vmatpush.bf16.msra.mxu2 %v636_v46 }
  0xdf   :  { %v207_v50 = vperm.slane %v206_v48, 0 }
  0xe1   :  { %v209_v54 = vmul.f32 %v207_v50, %v204_v49  ;;  %v208_v55 = vmul.f32 %v207_v50, %v203_v52  ;;  %v635_v49 = vld [vmem:[#allocation6 + $0x28] sm:$0xff]  ;;  %v633_v52 = vld [vmem:[#allocation6 + $0x18] sm:$0xff] }
  0xe2   :  { %489 = vmatpush.bf16.msra.mxu2 %v635_v49 }
  0xe3   :  { %v215_v56 = vadd.f32 %v643_v51, %v209_v54  ;;  %v214_v57 = vadd.f32 %v643_v51, %v208_v55  ;;  %v634_v51 = vld [vmem:[#allocation6 + $0x20] sm:$0xff]  ;;  %v632_v55 = vld [vmem:[#allocation6 + $0x10] sm:$0xff] }
  0xe5   :  { %v546_v58 = vmul.f32 -1.442695, %v215_v56  ;;  %v545_v59 = vmul.f32 -1.442695, %v214_v57 }
  0xe6   :  { %490 = vmatpush.bf16.msra.mxu2 %v634_v51 }
  0xe7   :  { %647 = vpow2.f32 %v546_v58  ;;  %v631_v58 = vld [vmem:[#allocation6 + $0x8] sm:$0xff] }
  0xe8   :  { %649 = vpow2.f32 %v545_v59 }
  0xea   :  { %491 = vmatpush.bf16.msra.mxu2 %v633_v52 }
  0xed   :  { %v648_v60 = vpop.eup %647 }
  0xee   :  { %v650_v61 = vpop.eup %649  ;;  %v223_v62 = vadd.f32 1.0, %v648_v60  ;;  %492 = vmatpush.bf16.msra.mxu2 %v632_v55 }
  0xef   :  { %v222_v63 = vadd.f32 1.0, %v650_v61  ;;  %v371_v61 = vld [vmem:[%s826_s5] sm:$0x1] }
  0xf0   :  { %651 = vrcp.f32 %v223_v62  ;;  %v250_v6 = vand.u32 2147483648, %v223_v62  ;;  %v248_v9 = vand.u32 2147483647, %v223_v62  ;;  %vm244_vm5 = vweird.f32 %v223_v62 }
  0xf1   :  { %653 = vrcp.f32 %v222_v63  ;;  %v235_v7 = vand.u32 2147483648, %v222_v63  ;;  %v233_v11 = vand.u32 2147483647, %v222_v63  ;;  %vm229_vm6 = vweird.f32 %v222_v63 }
  0xf2   :  { %v251_v14 = vor.u32 1.1754944e-38, %v250_v6  ;;  %vm249_vm9 = vcmp.eq.f32.partialorder %v248_v9, 8.507059e+37  ;;  %493 = vmatpush.bf16.msra.mxu2 %v631_v58 }
  0xf3   :  { %v236_v15 = vor.u32 1.1754944e-38, %v235_v7  ;;  %vm234_vm10 = vcmp.eq.f32.partialorder %v233_v11, 8.507059e+37 }
  0xf6   :  { %v652_v0 = vpop.eup %651 }
  0xf7   :  { %v654_v1 = vpop.eup %653  ;;  %v240_v2 = vmul.f32 %v652_v0, %v223_v62  ;;  %vm245_vm3 = vweird.f32 %v652_v0  ;;  %v630_v62 = vld [vmem:[#allocation6] sm:$0xff] }
  0xf8   :  { %v225_v3 = vmul.f32 %v654_v1, %v222_v63  ;;  %vm230_vm4 = vweird.f32 %v654_v1  ;;  %vm246_vm7 = vmor %vm244_vm5, %vm245_vm3  ;;  %494 = vmatpush.bf16.msra.mxu2 %v630_v62 }
  0xf9   :  { %v241_v4 = vsub.f32 1.0, %v240_v2  ;;  %vm231_vm8 = vmor %vm229_vm6, %vm230_vm4 }
  0xfa   :  { %v226_v5 = vsub.f32 1.0, %v225_v3 }
  0xfb   :  { %v242_v8 = vmul.f32 %v652_v0, %v241_v4  ;;  %v644_v4 = vld [vmem:[%s828_s7] ss:$0 sm:$0xff] }
  0xfc   :  { %v227_v10 = vmul.f32 %v654_v1, %v226_v5 }
  0xfd   :  { %v243_v12 = vadd.f32 %v652_v0, %v242_v8 }
  0xfe   :  { %v228_v13 = vadd.f32 %v654_v1, %v227_v10 }
  0xff   :  { %v247_v16 = vsel %vm246_vm7, %v652_v0, %v243_v12 }
 0x100   :  { %v232_v17 = vsel %vm231_vm8, %v654_v1, %v228_v13  ;;  %v252_v18 = vsel %vm249_vm9, %v251_v14, %v247_v16 }
 0x101   :  { %v237_v19 = vsel %vm234_vm10, %v236_v15, %v232_v17  ;;  %v255_v20 = vmul.f32 %v252_v18, %v215_v56 }
 0x102   :  { %v254_v21 = vmul.f32 %v237_v19, %v214_v57 }
 0x103   :  { %v257_v22 = vmul.f32 0.0, %v255_v20 }
 0x105   :  { %v258_v23 = vpack.c.bf16 %v257_v22, %v254_v21 }
 0x107   :  { %331 = vmatmul.bf16.vlgmr.msra.gmra.mxu1 %v258_v23 }
 0x184   :  { %v332_v24 = vpop.f32.mrf.mxu1 }
 0x185   :  { %v344_v26 = vmul.f32 %v332_v24, %v332_v24 }
 0x18c   :  { %v334_v25 = vpop.f32.mrf.mxu1 }
 0x18d   :  { %v337_v27 = vadd.f32 %v334_v25, %v332_v24  ;;  %v345_v28 = vmul.f32 %v334_v25, %v334_v25 }
 0x18f   :  { %v338_v29 = vrot.slane %v337_v27, 4  ;;  %v346_v30 = vadd.f32 %v345_v28, %v344_v26 }
 0x191   :  { %v339_v31 = vadd.f32 %v338_v29, %v337_v27  ;;  %v347_v32 = vrot.slane %v346_v30, 4 }
 0x193   :  { %v340_v33 = vrot.slane %v339_v31, 2  ;;  %v348_v34 = vadd.f32 %v347_v32, %v346_v30 }
 0x195   :  { %v341_v35 = vadd.f32 %v340_v33, %v339_v31  ;;  %v349_v36 = vrot.slane %v348_v34, 2 }
 0x197   :  { %v342_v37 = vrot.slane %v341_v35, 1  ;;  %v350_v38 = vadd.f32 %v349_v36, %v348_v34 }
 0x199   :  { %v343_v39 = vadd.f32 %v342_v37, %v341_v35  ;;  %v351_v40 = vrot.slane %v350_v38, 1 }
 0x19b   :  { %v352_v41 = vadd.f32 %v351_v40, %v350_v38  ;;  %v353_v42 = vmul.f32 0.125, %v343_v39 }
 0x19d   :  { %v354_v44 = vmul.f32 0.125, %v352_v41  ;;  %v355_v45 = vmul.f32 %v353_v42, %v353_v42  ;;  %v370_v1 = vsub.f32 %v334_v25, %v353_v42  ;;  %v369_v3 = vsub.f32 %v332_v24, %v353_v42 }
 0x19f   :  { %v356_v47 = vsub.f32 %v354_v44, %v355_v45 }
 0x1a1   :  { %v357_v48 = vmax.f32 %v356_v47, 0.0 }
 0x1a3   :  { %v358_v50 = vadd.f32 1e-08, %v357_v48 }
 0x1a5   :  { %655 = vrsqrt.f32 %v358_v50  ;;  %vm365_vm12 = vweird.f32 %v358_v50 }
 0x1ab   :  { %v656_v53 = vpop.eup %655 }
 0x1ac   :  { %v360_v54 = vmul.f32 %v656_v53, %v358_v50  ;;  %vm366_vm11 = vweird.f32 %v656_v53 }
 0x1ad   :  { %vm367_vm13 = vmor %vm365_vm12, %vm366_vm11 }
 0x1ae   :  { %v361_v56 = vmul.f32 %v656_v53, %v360_v54 }
 0x1b0   :  { %v362_v57 = vmul.f32 0.5, %v361_v56 }
 0x1b2   :  { %v363_v59 = vsub.f32 1.5, %v362_v57 }
 0x1b4   :  { %v364_v60 = vmul.f32 %v656_v53, %v363_v59 }
 0x1b6   :  { %v368_v63 = vsel %vm367_vm13, %v656_v53, %v364_v60 }
 0x1b7   :  { %v372_v0 = vmul.f32 %v371_v61, %v368_v63 }
 0x1b9   :  { %v373_v2 = vperm.slane %v372_v0, 0 }
 0x1bb   :  { %v375_v5 = vmul.f32 %v373_v2, %v370_v1  ;;  %v374_v6 = vmul.f32 %v373_v2, %v369_v3 }
 0x1bd   :  { %v380_v7 = vadd.f32 %v644_v4, %v374_v6  ;;  %v381_v8 = vadd.f32 %v644_v4, %v375_v5 }
 0x1bf   :  { %v579_v9 = vmul.f32 -1.442695, %v380_v7  ;;  %v580_v10 = vmul.f32 -1.442695, %v381_v8 }
 0x1c1   :  { %657 = vpow2.f32 %v579_v9 }
 0x1c2   :  { %659 = vpow2.f32 %v580_v10 }
 0x1c7   :  { %v658_v11 = vpop.eup %657 }
 0x1c8   :  { %v660_v12 = vpop.eup %659  ;;  %v388_v13 = vadd.f32 1.0, %v658_v11 }
 0x1c9   :  { %v389_v14 = vadd.f32 1.0, %v660_v12 }
 0x1ca   :  { %661 = vrcp.f32 %v388_v13  ;;  %v401_v20 = vand.u32 2147483648, %v388_v13  ;;  %v399_v23 = vand.u32 2147483647, %v388_v13  ;;  %vm395_vm0 = vweird.f32 %v388_v13 }
 0x1cb   :  { %663 = vrcp.f32 %v389_v14  ;;  %v416_v24 = vand.u32 2147483648, %v389_v14  ;;  %v414_v26 = vand.u32 2147483647, %v389_v14  ;;  %vm410_vm2 = vweird.f32 %v389_v14 }
 0x1cc   :  { %v402_v28 = vor.u32 1.1754944e-38, %v401_v20  ;;  %vm400_vm3 = vcmp.eq.f32.partialorder %v399_v23, 8.507059e+37 }
 0x1cd   :  { %v417_v31 = vor.u32 1.1754944e-38, %v416_v24  ;;  %vm415_vm5 = vcmp.eq.f32.partialorder %v414_v26, 8.507059e+37 }
 0x1d0   :  { %v662_v15 = vpop.eup %661 }
 0x1d1   :  { %v664_v16 = vpop.eup %663  ;;  %v391_v17 = vmul.f32 %v662_v15, %v388_v13  ;;  %vm396_vm14 = vweird.f32 %v662_v15 }
 0x1d2   :  { %v406_v18 = vmul.f32 %v664_v16, %v389_v14  ;;  %vm411_vm15 = vweird.f32 %v664_v16  ;;  %vm397_vm1 = vmor %vm395_vm0, %vm396_vm14 }
 0x1d3   :  { %v392_v19 = vsub.f32 1.0, %v391_v17  ;;  %vm412_vm4 = vmor %vm410_vm2, %vm411_vm15 }
 0x1d4   :  { %v407_v21 = vsub.f32 1.0, %v406_v18 }
 0x1d5   :  { %v393_v22 = vmul.f32 %v662_v15, %v392_v19 }
 0x1d6   :  { %v408_v25 = vmul.f32 %v664_v16, %v407_v21 }
 0x1d7   :  { %v394_v27 = vadd.f32 %v662_v15, %v393_v22 }
 0x1d8   :  { %v409_v29 = vadd.f32 %v664_v16, %v408_v25 }
 0x1d9   :  { %v398_v30 = vsel %vm397_vm1, %v662_v15, %v394_v27 }
 0x1da   :  { %v403_v32 = vsel %vm400_vm3, %v402_v28, %v398_v30  ;;  %v413_v33 = vsel %vm412_vm4, %v664_v16, %v409_v29 }
 0x1db   :  { %v418_v34 = vsel %vm415_vm5, %v417_v31, %v413_v33  ;;  %v420_v35 = vmul.f32 %v403_v32, %v380_v7 }
 0x1dc   :  { %v421_v36 = vmul.f32 %v418_v34, %v381_v8 }
 0x1de   :  { %v422_v37 = vpack.c.bf16 %v421_v36, %v420_v35 }
 0x1e0   :  { %495 = vmatmul.bf16.vlgmr.msra.gmra.mxu2 %v422_v37 }
 0x263   :  { %v496_v38 = vpop.f32.mrf.mxu2 }
 0x264   :  { %501 = vst [vmem:[%s829_s8] sm:$0xff] %v496_v38 }
 0x26b   :  { %v498_v39 = vpop.f32.mrf.mxu2 }
 0x26c   :  { %502 = vst [vmem:[%s829_s8 + $0x8] sm:$0xff] %v498_v39 }
 0x26d   :  { %507 = vsyncpa [#allocation3], 1 }
 0x26e   :  { %508 = vsyncpa [#allocation5], 1 }

</bundles_post_ra>
